<compile_context>
chip_gen: v7x
topology: tpu7x:2x2x1
jax: 0.10.0
libtpu: 0.0.40
codegen_flags: <defaults>
</compile_context>

<pallas_src>
import math

import numpy as np
import jax
import jax.numpy as jnp
from jax import lax
from jax.experimental import pallas as pl
from jax.experimental.pallas import tpu as pltpu


def _round_up(x: int, m: int) -> int:
    return ((x + m - 1) // m) * m


# x(tm, tk) . w(tn, tk) contracted on dim 1 of both -> (tm, tn); no transpose.
_DN = (((1,), (1,)), ((), ()))


def _default_tiles():
    """Generation-aware (tm, tn, tk, vmem_cap_bytes)."""
    try:
        kind = jax.devices()[0].device_kind.lower()
    except Exception:  # pragma: no cover - defensive
        kind = ""
    if "v5" in kind:
        # v5e: 128 MiB physical VMEM but 16 MiB default scoped limit.
        return 512, 512, 512, 64 << 20
    if "7" in kind:
        # v7x: only 64 MiB physical VMEM per TensorCore -> keep headroom.
        return 512, 512, 1024, 48 << 20
    # v6e (and other 128 MiB-VMEM parts).
    return 512, 512, 1024, 96 << 20


def _make_tiled_kernel(has_bias: bool, use_scratch: bool):
    """Tiled (M/tm, N/tn, K/tk) kernel; reduction axis last ('arbitrary')."""

    def kernel(*refs):
        if has_bias and use_scratch:
            x_ref, w_ref, b_ref, o_ref, acc_ref = refs
        elif has_bias:
            x_ref, w_ref, b_ref, o_ref = refs
            acc_ref = o_ref                      # f32 out: accumulate in place
        elif use_scratch:
            x_ref, w_ref, o_ref, acc_ref = refs
            b_ref = None
        else:
            x_ref, w_ref, o_ref = refs
            acc_ref = o_ref
            b_ref = None

        k = pl.program_id(2)

        @pl.when(k == 0)
        def _():
            acc_ref[...] = jnp.zeros_like(acc_ref)

        # Pure MXU inner step: weight kept (tn, tk); contraction on last dims.
        acc_ref[...] += lax.dot_general(
            x_ref[...], w_ref[...], dimension_numbers=_DN,
            preferred_element_type=jnp.float32)

        if has_bias or use_scratch:
            @pl.when(k == pl.num_programs(2) - 1)
            def _():
                out = acc_ref[...]
                if has_bias:
                    out = out + b_ref[...].astype(jnp.float32)  # bias added once
                o_ref[...] = out.astype(o_ref.dtype)

    return kernel


def _make_small_kernel(has_bias: bool):
    """Single-block kernel: whole problem resident in VMEM, no grid."""

    def kernel(*refs):
        if has_bias:
            x_ref, w_ref, b_ref, o_ref = refs
        else:
            x_ref, w_ref, o_ref = refs
        acc = lax.dot_general(x_ref[...], w_ref[...], dimension_numbers=_DN,
                              preferred_element_type=jnp.float32)
        if has_bias:
            acc = acc + b_ref[...].astype(jnp.float32)
        o_ref[...] = acc.astype(o_ref.dtype)

    return kernel


def my_linear(x, weight, bias=None, *, tiles=None, compute_dtype=None,
              force_grid=False):
    """Pallas equivalent of MyLinear.forward -> (F.linear(x, W, b), W)."""
    M, K = x.shape
    N, K2 = weight.shape
    assert K == K2
    out_dtype = x.dtype
    has_bias = bias is not None

    # Optional bf16 MXU feed (f32 accumulation kept, output stays x.dtype).
    if compute_dtype is not None:
        x_c = x.astype(compute_dtype)
        w_c = weight.astype(compute_dtype)
    else:
        x_c, w_c = x, weight
    itemsize = jnp.dtype(x_c.dtype).itemsize

    # ---------------- Small-shape fast path ----------------
    # One un-gridded VMEM block (block_shape == full dims => no padding, no
    # masked stores from padding, no per-step pipeline overhead).
    total_bytes = (M * K + N * K + M * N) * itemsize + M * N * 4
    if (not force_grid and total_bytes <= (8 << 20)
            and M <= 1024 and N <= 1024 and K <= 2048):
        args = [x_c, w_c]
        if has_bias:
            args.append(bias.reshape(1, N))
        y = pl.pallas_call(
            _make_small_kernel(has_bias),
            out_shape=jax.ShapeDtypeStruct((M, N), out_dtype),
        )(*args)
        return y, weight

    # ---------------- Tiled path ----------------
    tm, tn, tk, vmem_cap = tiles if tiles is not None else _default_tiles()

    m_align = 16 if itemsize < 4 else 8          # bf16 min sublane tile is 16
    tm = min(tm, _round_up(M, m_align))
    tn = min(tn, _round_up(N, 128))
    tk = min(tk, _round_up(K, 128))

    Mp, Np, Kp = _round_up(M, tm), _round_up(N, tn), _round_up(K, tk)

    # Zero K-padding is exact for the dot product; lane-dense output (tn%128==0).
    x_p = x_c if (Mp == M and Kp == K) else jnp.pad(x_c, ((0, Mp - M), (0, Kp - K)))
    w_p = w_c if (Np == N and Kp == K) else jnp.pad(w_c, ((0, Np - N), (0, Kp - K)))

    in_arrays = [x_p, w_p]
    in_specs = [
        pl.BlockSpec((tm, tk), lambda i, j, k: (i, k)),   # x tile
        pl.BlockSpec((tn, tk), lambda i, j, k: (j, k)),   # W tile (no transpose)
    ]
    if has_bias:
        b_p = bias.reshape(1, N)
        if Np != N:
            b_p = jnp.pad(b_p, ((0, 0), (0, Np - N)))
        in_arrays.append(b_p)
        in_specs.append(pl.BlockSpec((1, tn), lambda i, j, k: (0, j)))

    # f32 output accumulates directly into o_ref; scratch only for bf16 etc.
    use_scratch = jnp.dtype(out_dtype) != jnp.dtype(jnp.float32)
    scratch = [pltpu.VMEM((tm, tn), jnp.float32)] if use_scratch else []

    grid = (Mp // tm, Np // tn, Kp // tk)

    # VMEM budget: double-buffered tiles (+bias) + f32 scratch, 2x headroom.
    need = 2 * (tm * tk + tn * tk + (tn if has_bias else 0)) * itemsize
    need += 2 * tm * tn * jnp.dtype(out_dtype).itemsize
    if use_scratch:
        need += tm * tn * 4
    vmem_limit = int(min(max(2 * need + (8 << 20), 32 << 20), vmem_cap))

    cost = pl.CostEstimate(
        flops=2 * Mp * Np * Kp,
        transcendentals=0,
        bytes_accessed=int(
            Mp * Kp * itemsize * (Np // tn)                 # x re-read per j
            + Np * Kp * itemsize * (Mp // tm)               # W re-read per i
            + (Np * itemsize * (Mp // tm) if has_bias else 0)
            + Mp * Np * jnp.dtype(out_dtype).itemsize))

    y_p = pl.pallas_call(
        _make_tiled_kernel(has_bias, use_scratch),
        out_shape=jax.ShapeDtypeStruct((Mp, Np), out_dtype),
        grid=grid,
        in_specs=in_specs,
        out_specs=pl.BlockSpec((tm, tn), lambda i, j, k: (i, j)),
        scratch_shapes=scratch,
        compiler_params=pltpu.CompilerParams(
            dimension_semantics=("parallel", "parallel", "arbitrary"),
            vmem_limit_bytes=vmem_limit),
        cost_estimate=cost,
    )(*in_arrays)

    y = y_p if (Mp == M and Np == N) else y_p[:M, :N]
    return y, weight


if __name__ == "__main__":
    key = jax.random.PRNGKey(0)

    # ---- Case 1: module-like small shapes (batch=8, in=32, out=64), f32+bias.
    in_features, out_features, batch = 32, 64, 8
    k1, k2, k3, key = jax.random.split(key, 4)
    stdv = 1.0 / math.sqrt(in_features)   # mimics reset_parameters()
    w1 = jax.random.uniform(k2, (out_features, in_features), jnp.float32, -stdv, stdv)
    b1 = jax.random.uniform(k3, (out_features,), jnp.float32, -stdv, stdv)
    x1 = jax.random.normal(k1, (batch, in_features), jnp.float32)

    y1, w1_out = my_linear(x1, w1, b1)
    jax.block_until_ready((y1, w1_out))

    ref1 = (np.asarray(x1, np.float64) @ np.asarray(w1, np.float64).T
            + np.asarray(b1, np.float64)).astype(np.float32)
    assert y1.shape == (batch, out_features)
    # Loose-ish tolerance: MXU default-precision f32 matmul may use bf16 passes.
    assert jnp.allclose(y1, ref1, atol=3e-2, rtol=3e-2)
    assert jnp.array_equal(w1_out, w1)

    # ---- Case 2: tiled-grid path, no bias, f32 (K accumulation + K padding).
    M2, K2_, N2 = 256, 1536, 256
    k1, k2, key = jax.random.split(key, 3)
    stdv = 1.0 / math.sqrt(K2_)
    w2 = jax.random.uniform(k2, (N2, K2_), jnp.float32, -stdv, stdv)
    x2 = jax.random.normal(k1, (M2, K2_), jnp.float32)

    y2, _ = my_linear(x2, w2, None, force_grid=True)
    jax.block_until_ready(y2)

    ref2 = (np.asarray(x2, np.float64) @ np.asarray(w2, np.float64).T).astype(np.float32)
    assert y2.shape == (M2, N2)
    assert jnp.allclose(y2, ref2, atol=3e-2, rtol=3e-2)

    # ---- Case 3: bf16 tiled path with bias (exercises f32 scratch epilogue).
    M3, K3, N3 = 64, 256, 128
    k1, k2, k3 = jax.random.split(key, 3)
    stdv = 1.0 / math.sqrt(K3)
    w3 = jax.random.uniform(k2, (N3, K3), jnp.float32, -stdv, stdv).astype(jnp.bfloat16)
    b3 = jax.random.uniform(k3, (N3,), jnp.float32, -stdv, stdv).astype(jnp.bfloat16)
    x3 = jax.random.normal(k1, (M3, K3), jnp.float32).astype(jnp.bfloat16)

    y3, _ = my_linear(x3, w3, b3, force_grid=True)
    jax.block_until_ready(y3)

    ref3 = (np.asarray(x3, np.float32) @ np.asarray(w3, np.float32).T
            + np.asarray(b3, np.float32))
    assert y3.shape == (M3, N3)
    assert jnp.allclose(np.asarray(y3, np.float32), ref3, atol=5e-2, rtol=5e-2)

    print("KERNEL_OK")
</pallas_src>

<mosaic_0001>
module attributes {stable_mosaic.version = 11 : i64} {
  func.func @kernel(%arg0: memref<8x32xf32, #tpu.memory_space<vmem>>, %arg1: memref<64x32xf32, #tpu.memory_space<vmem>>, %arg2: memref<1x64xf32, #tpu.memory_space<vmem>>, %arg3: memref<8x64xf32, #tpu.memory_space<vmem>>) attributes {dimension_semantics = [], scalar_prefetch = 0 : i64, scratch_operands = 0 : i64, tpu.core_type = #tpu.core_type<tc>} {
    %c0 = arith.constant 0 : index
    %c0_0 = arith.constant 0 : index
    %0 = vector.load %arg0[%c0, %c0_0] : memref<8x32xf32, #tpu.memory_space<vmem>>, vector<8x32xf32>
    %c0_1 = arith.constant 0 : index
    %c0_2 = arith.constant 0 : index
    %1 = vector.load %arg1[%c0_1, %c0_2] : memref<64x32xf32, #tpu.memory_space<vmem>>, vector<64x32xf32>
    %cst = arith.constant dense<0.000000e+00> : vector<8x64xf32>
    %2 = tpu.matmul %0, %1, %cst {dimension_numbers = #tpu.dot_dimension_numbers<[1], [1], [0], [0], [0, 0, 1, 0], [], []>} : vector<8x32xf32>, vector<64x32xf32>, vector<8x64xf32> -> vector<8x64xf32>
    %c0_3 = arith.constant 0 : index
    %c0_4 = arith.constant 0 : index
    %3 = vector.load %arg2[%c0_3, %c0_4] : memref<1x64xf32, #tpu.memory_space<vmem>>, vector<1x64xf32>
    %4 = vector.broadcast %3 : vector<1x64xf32> to vector<8x64xf32>
    %5 = arith.addf %2, %4 : vector<8x64xf32>
    %c0_5 = arith.constant 0 : index
    %c0_6 = arith.constant 0 : index
    %6 = vector.load %arg3[%c0_5, %c0_6] : memref<8x64xf32, #tpu.memory_space<vmem>>, vector<8x64xf32>
    tpu.vector_store %arg3[%c0_5, %c0_6], %5 {strides = array<i32>} : memref<8x64xf32, #tpu.memory_space<vmem>>, vector<8x64xf32>,
    return
  }
}

</mosaic_0001>

<bundles_post_ra>
// kernel: tpu_custom_call.1
= control target key start
LH: loop header
LB: loop body
LE: loop exit
PB: predicated region body
PF: predicated region fallthrough
CT: control target
= control target key end

     0   :  { %vm31_vm0 = vcmask 261120   ;;  %v227_v2 = vmov 0.0|0.0   ;;  %vm228_vm2 = vmmov 0   ;;  %v229_v5 = vmov 0.0   ;;  %s308_s0 = inlined_call_operand.vmem [shape: f32[8,32], index: 0, kind: input, shape index: {}]   ;;  %s309_s1 = inlined_call_operand.vmem [shape: f32[64,32], index: 1, kind: input, shape index: {}]   ;;  %s310_s2 = inlined_call_operand.vmem [shape: f32[1,64], index: 2, kind: input, shape index: {}]   ;;  %s311_s3 = inlined_call_operand.hbm [shape: f32[8,64], index: 3, kind: output, shape index: {}]  }
   0x1   :  { %v16_v0 = vld [vmem:[%s309_s1] sm:$0xff]  ;;  %v17_v1 = vld [vmem:[%s309_s1 + $0x8] sm:$0xff]  ;;  %183 = vmatprep.subr.bf16.mxu0 %v227_v2  ;;  %vm259_vm1 = vmpackc.low %vm31_vm0, %vm31_vm0  ;;  %180 = vmatprep.mubr.msk.f32.mxu0 %vm228_vm2, %v229_v5 }
   0x2   :  { %v184_v3 = vpack.c.bf16 %v17_v1, %v16_v0 }
   0x4   :  { %186 = vmatpush3.bf16.xpose.msk.msra.mxu0 %vm259_vm1, %v184_v3 }
   0x5   :  { %8 = vsyncpa [#allocation3], 0  ;;  %187 = vmatprep.subr.bf16.mxu0 %v227_v2  ;;  %v18_v6 = vld [vmem:[%s309_s1 + $0x10] sm:$0xff]  ;;  %v19_v7 = vld [vmem:[%s309_s1 + $0x18] sm:$0xff]  ;;  %s230_s5 = smov [#allocation2]   ;;  %vm129_vm3 = vcmask 523264  }
   0x6   :  { %v188_v8 = vpack.c.bf16 %v19_v7, %v18_v6  ;;  %v20_v9 = vld [vmem:[%s309_s1 + $0x20] sm:$0xff]  ;;  %v21_v10 = vld [vmem:[%s309_s1 + $0x28] sm:$0xff]  ;;  %v22_v12 = vld [vmem:[%s309_s1 + $0x30] sm:$0xff]  ;;  %s137_s6 = sshll.u32 %s230_s5, 4  ;;  %s138_s6 = int_to_ptr.vmem [resolvable:$true] %s137_s6 }
   0x7   :  { %v192_v11 = vpack.c.bf16 %v21_v10, %v20_v9  ;;  %v23_v13 = vld [vmem:[%s309_s1 + $0x38] sm:$0xff]  ;;  %v15_v15 = vld [vmem:[%s308_s0] sm:$0xff]  ;;  %s203_s1 = scalar_lea.vmem %s138_s6, 128  ;;  %p208_p1 = scmp.lt.s32.totalorder %s138_s6, %s138_s6 }
   0x8   :  { %v196_v14 = vpack.c.bf16 %v23_v13, %v22_v12  ;;  %v145_v16 = vld [vmem:[%s310_s2] ss:$0 sm:$0xff]  ;;  %p204_p0 = scmp.ne.s32.totalorder %s138_s6, %s203_s1  ;;  %p209_p2 = scmp.lt.s32.totalorder %s203_s1, %s203_s1 }
   0xa   :  { %p210_p3 = por %p209_p2, %p208_p1 }
   0xc   :  { %190 = vmatpush3.bf16.xpose.msk.msra.mxu0 %vm259_vm1, %v188_v8  ;;  %p211_p4 = pnand %p210_p3, %p204_p0 }
   0xd   :  { %191 = vmatprep.subr.bf16.mxu0 %v227_v2 }
  0x14   :  { %194 = vmatpush3.bf16.xpose.msk.msra.mxu0 %vm259_vm1, %v192_v11 }
  0x15   :  { %195 = vmatprep.subr.bf16.mxu0 %v227_v2 }
  0x1c   :  { %198 = vmatpush3.bf16.xpose.msk.msra.mxu0 %vm259_vm1, %v196_v14 }
  0x23   :  { %181 = vmatmul.mubr.msk.f32.vlgmr.msra.gmra.mrb[0].mxu0 %vm31_vm0, %v15_v15 }
  0xf6   :  { %v125_v17 = vpop.f32.mrb[0].mxu0 }
  0xf7   :  { %v126_v18 = vadd.f32 %v145_v16, %v125_v17  ;;  %v182_v19 = vpop.f32.mrb[1].mxu0 }
  0xf9   :  { %130 = vst.msk [vmem:[#allocation2] sm:$0xff] %vm129_vm3, %v126_v18 }
  0xfa   :  { %214 = shalt.err (!%p211_p4)
}
  0xfb   :  { %s215_s8 = scalar_lea.hbm %s311_s3, 128 }
  0xfc   :  { %p216_p5 = scmp.ne.s32.totalorder %s311_s3, %s215_s8  ;;  %p219_p6 = scmp.lt.u32.totalorder %s215_s8, %s311_s3 }
  0xfe   :  { %p221_p7 = pnand %p219_p6, %p216_p5 }
 0x100   :  { %224 = shalt.err (!%p221_p7)
}
 0x101   :  { %140 = dma.vmem_to_hbm [thread:$0]  %s138_s6, 128, %s311_s3, [#allocation3]  }
 0x102   :  { %225 = dma.done.wait [#allocation3], 128  }
 0x103   :  { %226 = vsyncadd [#allocation3], 4294967168 }
 0x104   :  { %144 = vsyncpa [#allocation3], 1 }

</bundles_post_ra>
